<compile_context>
chip_gen: v6e
topology: v6e:2x2x1
jax: 0.10.0
libtpu: 0.0.40
codegen_flags: <defaults>
</compile_context>

<pallas_src>
import functools

import jax
import jax.numpy as jnp
from jax.experimental import pallas as pl
from jax.experimental.pallas import tpu as pltpu


def _bn_relu_conv_kernel(x_ref, scale_ref, shift_ref, wband_ref, bias_ref, o_ref):
    # x_ref:     (1, H, W*Cin)        f32   activations, width*channel packed lanes
    # scale_ref: (1, W*Cin)           f32   folded BN scale, tiled over W
    # shift_ref: (1, W*Cin)           f32   folded BN shift, tiled over W
    # wband_ref: (KH, W*Cin, Wo*Cout) bf16  width-Toeplitz conv weights (W padding folded in)
    # bias_ref:  (1, Wo*Cout)         f32   conv bias, tiled over Wo
    # o_ref:     (1, Ho, Wo*Cout)
    _, H, WC = x_ref.shape
    KH = wband_ref.shape[0]
    _, Ho, NO = o_ref.shape
    pad_h = (Ho + KH - 1 - H) // 2           # symmetric H padding

    # --- BatchNorm (folded affine, f32) + ReLU; cast to bf16 only for the MXU feed ---
    y = jnp.maximum(x_ref[0] * scale_ref[0] + shift_ref[0], 0.0)   # (H, W*Cin) f32
    y = y.astype(wband_ref.dtype)

    # --- H zero-padding: a couple of zero rows in-register (no VMEM scratch) ---
    if pad_h > 0:
        zrow = jnp.zeros((pad_h, WC), y.dtype)
        yp = jnp.concatenate([zrow, y, zrow], axis=0)              # (H + 2*pad_h, W*Cin)
    else:
        yp = y

    # --- conv = KH row-shifted dense matmuls against width-Toeplitz weights ---
    # acc is (Ho, Wo*Cout) f32 (~2 vregs at this size).
    acc = jnp.zeros((Ho, NO), jnp.float32)
    for dy in range(KH):                                           # static, unrolled
        acc = acc + jnp.dot(yp[dy:dy + Ho, :], wband_ref[dy],
                            preferred_element_type=jnp.float32)

    o_ref[0] = (acc + bias_ref[0]).astype(o_ref.dtype)             # lane-dense (Ho, 128) store


@functools.partial(jax.jit, static_argnames=("padding",))
def basic_conv2d(x_nchw, gamma, beta, running_mean, running_var, eps,
                 w_oihw, conv_bias, padding=1):
    N, Cin, H, W = x_nchw.shape
    Cout, _, KH, KW = w_oihw.shape
    ph = pw = padding
    Ho = H + 2 * ph - KH + 1
    Wo = W + 2 * pw - KW + 1

    # ---- fold BatchNorm (eval mode) into per-channel affine ----
    scale = gamma / jnp.sqrt(running_var + eps)                    # (Cin,)
    shift = beta - running_mean * scale                            # (Cin,)

    # ---- layout glue (not the hot path) ----
    # activations: NCHW -> NHWC -> (N, H, W*Cin): packed lane index = w*Cin + ci
    x_p = jnp.transpose(x_nchw, (0, 2, 3, 1)).reshape(N, H, W * Cin)
    scale_t = jnp.tile(scale, W)[None, :]                          # (1, W*Cin)
    shift_t = jnp.tile(shift, W)[None, :]                          # (1, W*Cin)
    bias_t = jnp.tile(conv_bias, Wo)[None, :]                      # (1, Wo*Cout)

    # width-Toeplitz weights: Wband[dy, iw*Cin+ci, ox*Cout+co] = w[co, ci, dy, dx]
    # with dx = iw - ox + pw (zero where out of range) => W zero-padding folded in.
    w_hwio = jnp.transpose(w_oihw, (2, 3, 1, 0))                   # (KH, KW, Cin, Cout)
    dx_i = jnp.arange(KW)[:, None, None]
    iw_i = jnp.arange(W)[None, :, None]
    ox_i = jnp.arange(Wo)[None, None, :]
    sel = (iw_i == ox_i - pw + dx_i).astype(w_hwio.dtype)          # (KW, W, Wo)
    wband = jnp.einsum("xwo,hxic->hwioc", sel, w_hwio)             # (KH, W, Cin, Wo, Cout)
    wband = wband.reshape(KH, W * Cin, Wo * Cout).astype(jnp.bfloat16)

    flops = 2 * N * KH * Ho * (W * Cin) * (Wo * Cout)              # performed MXU flops
    bytes_accessed = (x_p.size * 4 + wband.size * 2 + N * Ho * Wo * Cout * 4
                      + scale_t.size * 4 + shift_t.size * 4 + bias_t.size * 4)

    out_p = pl.pallas_call(
        _bn_relu_conv_kernel,
        out_shape=jax.ShapeDtypeStruct((N, Ho, Wo * Cout), x_nchw.dtype),
        grid_spec=pltpu.PrefetchScalarGridSpec(
            num_scalar_prefetch=0,
            grid=(N,),
            in_specs=[
                pl.BlockSpec((1, H, W * Cin), lambda b: (b, 0, 0)),
                pl.BlockSpec((1, W * Cin), lambda b: (0, 0)),
                pl.BlockSpec((1, W * Cin), lambda b: (0, 0)),
                pl.BlockSpec((KH, W * Cin, Wo * Cout), lambda b: (0, 0, 0)),
                pl.BlockSpec((1, Wo * Cout), lambda b: (0, 0)),
            ],
            out_specs=pl.BlockSpec((1, Ho, Wo * Cout), lambda b: (b, 0, 0)),
        ),
        compiler_params=pltpu.CompilerParams(
            dimension_semantics=("parallel",),
        ),
        cost_estimate=pl.CostEstimate(flops=flops, transcendentals=0,
                                      bytes_accessed=bytes_accessed),
    )(x_p, scale_t, shift_t, wband, bias_t)

    # unpack (N, Ho, Wo*Cout) -> NCHW to match PyTorch
    return jnp.transpose(out_p.reshape(N, Ho, Wo, Cout), (0, 3, 1, 2))


def _reference(x_nchw, gamma, beta, rmean, rvar, eps, w_oihw, conv_bias, padding):
    # Same math as the kernel: BN affine + ReLU in f32, conv operands quantized to
    # bf16 (matching the in-kernel MXU feed), f32 accumulation, f32 bias add.
    scale = gamma / jnp.sqrt(rvar + eps)
    shift = beta - rmean * scale
    y = jnp.maximum(
        x_nchw * scale[None, :, None, None] + shift[None, :, None, None], 0.0)
    y_q = y.astype(jnp.bfloat16).astype(jnp.float32)
    w_q = w_oihw.astype(jnp.bfloat16).astype(jnp.float32)
    out = jax.lax.conv_general_dilated(
        y_q, w_q, window_strides=(1, 1),
        padding=[(padding, padding), (padding, padding)],
        dimension_numbers=("NCHW", "OIHW", "NCHW"),
        precision=jax.lax.Precision.HIGHEST)
    return out + conv_bias[None, :, None, None]


if __name__ == "__main__":
    # BasicConv2d(in_channels=4, out_channels=8, kernel_size=3, padding=1)
    N, Cin, H, W = 2, 4, 16, 16
    Cout, KH, KW, padding = 8, 3, 3, 1
    eps = 1e-5

    key = jax.random.PRNGKey(0)
    k_x, k_w, k_b, k_g, k_be, k_m, k_v = jax.random.split(key, 7)

    x = jax.random.normal(k_x, (N, Cin, H, W), jnp.float32)
    # Conv2d parameters (deterministic synthetic init).
    w = jax.random.normal(k_w, (Cout, Cin, KH, KW), jnp.float32) * 0.1
    conv_bias = jax.random.normal(k_b, (Cout,), jnp.float32) * 0.1
    # BatchNorm2d parameters / running stats (nontrivial so the BN math is exercised).
    gamma = 1.0 + 0.1 * jax.random.normal(k_g, (Cin,), jnp.float32)
    beta = 0.1 * jax.random.normal(k_be, (Cin,), jnp.float32)
    running_mean = 0.1 * jax.random.normal(k_m, (Cin,), jnp.float32)
    running_var = 1.0 + 0.1 * jax.random.uniform(k_v, (Cin,), jnp.float32)

    out = basic_conv2d(x, gamma, beta, running_mean, running_var, eps,
                       w, conv_bias, padding=padding)
    out = jax.block_until_ready(out)

    ref = _reference(x, gamma, beta, running_mean, running_var, eps,
                     w, conv_bias, padding)
    assert out.shape == (N, Cout, H, W), out.shape
    # Reference uses identically bf16-quantized conv operands, so the only remaining
    # difference is f32 accumulation order.
    assert jnp.allclose(out, ref, atol=1e-3, rtol=1e-3), (
        float(jnp.max(jnp.abs(out - ref))))

    print("KERNEL_OK")
</pallas_src>

<mosaic_0001>
module attributes {stable_mosaic.version = 11 : i64} {
  func.func @_bn_relu_conv_kernel(%arg0: i32, %arg1: memref<1x16x64xf32, #tpu.memory_space<vmem>>, %arg2: memref<1x64xf32, #tpu.memory_space<vmem>>, %arg3: memref<1x64xf32, #tpu.memory_space<vmem>>, %arg4: memref<3x64x128xbf16, #tpu.memory_space<vmem>>, %arg5: memref<1x128xf32, #tpu.memory_space<vmem>>, %arg6: memref<1x16x128xf32, #tpu.memory_space<vmem>>) attributes {dimension_semantics = [#tpu.dimension_semantics<parallel>], iteration_bounds = array<i64: 2>, scalar_prefetch = 0 : i64, scratch_operands = 0 : i64, tpu.core_type = #tpu.core_type<tc>, window_params = [{transform_indices = @transform_0, window_bounds = array<i64: 1, 16, 64>}, {pipeline_mode = #tpu.pipeline_mode<synchronous>, transform_indices = @transform_1, window_bounds = array<i64: 1, 64>}, {pipeline_mode = #tpu.pipeline_mode<synchronous>, transform_indices = @transform_2, window_bounds = array<i64: 1, 64>}, {pipeline_mode = #tpu.pipeline_mode<synchronous>, transform_indices = @transform_3, window_bounds = array<i64: 3, 64, 128>}, {pipeline_mode = #tpu.pipeline_mode<synchronous>, transform_indices = @transform_4, window_bounds = array<i64: 1, 128>}, {transform_indices = @transform_5, window_bounds = array<i64: 1, 16, 128>}]} {
    %c0 = arith.constant 0 : index
    %c0_0 = arith.constant 0 : index
    %c0_1 = arith.constant 0 : index
    %0 = vector.load %arg1[%c0, %c0_0, %c0_1] : memref<1x16x64xf32, #tpu.memory_space<vmem>>, vector<1x16x64xf32>
    %1 = vector.shape_cast %0 : vector<1x16x64xf32> to vector<16x64xf32>
    %c0_2 = arith.constant 0 : index
    %c0_3 = arith.constant 0 : index
    %2 = vector.load %arg2[%c0_2, %c0_3] : memref<1x64xf32, #tpu.memory_space<vmem>>, vector<1x64xf32>
    %3 = vector.shape_cast %2 : vector<1x64xf32> to vector<64xf32>
    %4 = vector.shape_cast %3 : vector<64xf32> to vector<1x64xf32>
    %5 = vector.broadcast %4 : vector<1x64xf32> to vector<16x64xf32>
    %6 = arith.mulf %1, %5 : vector<16x64xf32>
    %c0_4 = arith.constant 0 : index
    %c0_5 = arith.constant 0 : index
    %7 = vector.load %arg3[%c0_4, %c0_5] : memref<1x64xf32, #tpu.memory_space<vmem>>, vector<1x64xf32>
    %8 = vector.shape_cast %7 : vector<1x64xf32> to vector<64xf32>
    %9 = vector.shape_cast %8 : vector<64xf32> to vector<1x64xf32>
    %10 = vector.broadcast %9 : vector<1x64xf32> to vector<16x64xf32>
    %11 = arith.addf %6, %10 : vector<16x64xf32>
    %cst = arith.constant 0.000000e+00 : f32
    %12 = vector.broadcast %cst : f32 to vector<16x64xf32>
    %13 = arith.maximumf %11, %12 : vector<16x64xf32>
    %14 = arith.truncf %13 : vector<16x64xf32> to vector<16x64xbf16>
    %cst_6 = arith.constant 0.000000e+00 : bf16
    %15 = vector.broadcast %cst_6 : bf16 to vector<1x64xbf16>
    %16 = tpu.concatenate %15, %14, %15 in 0 : vector<1x64xbf16>, vector<16x64xbf16>, vector<1x64xbf16> -> vector<18x64xbf16>
    %cst_7 = arith.constant 0.000000e+00 : f32
    %17 = vector.broadcast %cst_7 : f32 to vector<16x128xf32>
    %18 = vector.extract_strided_slice %16 {offsets = [0, 0], sizes = [16, 64], strides = [1, 1]} : vector<18x64xbf16> to vector<16x64xbf16>
    %c0_8 = arith.constant 0 : index
    %c0_9 = arith.constant 0 : index
    %c0_10 = arith.constant 0 : index
    %19 = vector.load %arg4[%c0_8, %c0_9, %c0_10] : memref<3x64x128xbf16, #tpu.memory_space<vmem>>, vector<1x64x128xbf16>
    %20 = vector.shape_cast %19 : vector<1x64x128xbf16> to vector<64x128xbf16>
    %cst_11 = arith.constant dense<0.000000e+00> : vector<16x128xf32>
    %21 = tpu.matmul %18, %20, %cst_11 {dimension_numbers = #tpu.dot_dimension_numbers<[1], [0], [0], [1], [0, 0, 1, 1], [], []>} : vector<16x64xbf16>, vector<64x128xbf16>, vector<16x128xf32> -> vector<16x128xf32>
    %22 = arith.addf %17, %21 : vector<16x128xf32>
    %23 = vector.extract_strided_slice %16 {offsets = [1, 0], sizes = [16, 64], strides = [1, 1]} : vector<18x64xbf16> to vector<16x64xbf16>
    %c1 = arith.constant 1 : index
    %c0_12 = arith.constant 0 : index
    %c0_13 = arith.constant 0 : index
    %24 = vector.load %arg4[%c1, %c0_12, %c0_13] : memref<3x64x128xbf16, #tpu.memory_space<vmem>>, vector<1x64x128xbf16>
    %25 = vector.shape_cast %24 : vector<1x64x128xbf16> to vector<64x128xbf16>
    %cst_14 = arith.constant dense<0.000000e+00> : vector<16x128xf32>
    %26 = tpu.matmul %23, %25, %cst_14 {dimension_numbers = #tpu.dot_dimension_numbers<[1], [0], [0], [1], [0, 0, 1, 1], [], []>} : vector<16x64xbf16>, vector<64x128xbf16>, vector<16x128xf32> -> vector<16x128xf32>
    %27 = arith.addf %22, %26 : vector<16x128xf32>
    %28 = vector.extract_strided_slice %16 {offsets = [2, 0], sizes = [16, 64], strides = [1, 1]} : vector<18x64xbf16> to vector<16x64xbf16>
    %c2 = arith.constant 2 : index
    %c0_15 = arith.constant 0 : index
    %c0_16 = arith.constant 0 : index
    %29 = vector.load %arg4[%c2, %c0_15, %c0_16] : memref<3x64x128xbf16, #tpu.memory_space<vmem>>, vector<1x64x128xbf16>
    %30 = vector.shape_cast %29 : vector<1x64x128xbf16> to vector<64x128xbf16>
    %cst_17 = arith.constant dense<0.000000e+00> : vector<16x128xf32>
    %31 = tpu.matmul %28, %30, %cst_17 {dimension_numbers = #tpu.dot_dimension_numbers<[1], [0], [0], [1], [0, 0, 1, 1], [], []>} : vector<16x64xbf16>, vector<64x128xbf16>, vector<16x128xf32> -> vector<16x128xf32>
    %32 = arith.addf %27, %31 : vector<16x128xf32>
    %c0_18 = arith.constant 0 : index
    %c0_19 = arith.constant 0 : index
    %33 = vector.load %arg5[%c0_18, %c0_19] : memref<1x128xf32, #tpu.memory_space<vmem>>, vector<1x128xf32>
    %34 = vector.shape_cast %33 : vector<1x128xf32> to vector<128xf32>
    %35 = vector.shape_cast %34 : vector<128xf32> to vector<1x128xf32>
    %36 = vector.broadcast %35 : vector<1x128xf32> to vector<16x128xf32>
    %37 = arith.addf %32, %36 : vector<16x128xf32>
    %c0_20 = arith.constant 0 : index
    %c0_21 = arith.constant 0 : index
    %c0_22 = arith.constant 0 : index
    %38 = vector.load %arg6[%c0_20, %c0_21, %c0_22] : memref<1x16x128xf32, #tpu.memory_space<vmem>>, vector<1x16x128xf32>
    %39 = vector.shape_cast %38 : vector<1x16x128xf32> to vector<16x128xf32>
    %40 = vector.shape_cast %37 : vector<16x128xf32> to vector<1x16x128xf32>
    tpu.vector_store %arg6[%c0_20, %c0_21, %c0_22], %40 {strides = array<i32>} : memref<1x16x128xf32, #tpu.memory_space<vmem>>, vector<1x16x128xf32>,
    return
  }
  func.func @transform_0(%arg0: i32) -> (i32, i32, i32) {
    %c0_i32 = arith.constant 0 : i32
    %c0_i32_0 = arith.constant 0 : i32
    %c0_i32_1 = arith.constant 0 : i32
    return %arg0, %c0_i32, %c0_i32_0 : i32, i32, i32
  }
  func.func @transform_1(%arg0: i32) -> (i32, i32) {
    %c0_i32 = arith.constant 0 : i32
    %c0_i32_0 = arith.constant 0 : i32
    %c0_i32_1 = arith.constant 0 : i32
    return %c0_i32, %c0_i32_0 : i32, i32
  }
  func.func @transform_2(%arg0: i32) -> (i32, i32) {
    %c0_i32 = arith.constant 0 : i32
    %c0_i32_0 = arith.constant 0 : i32
    %c0_i32_1 = arith.constant 0 : i32
    return %c0_i32, %c0_i32_0 : i32, i32
  }
  func.func @transform_3(%arg0: i32) -> (i32, i32, i32) {
    %c0_i32 = arith.constant 0 : i32
    %c0_i32_0 = arith.constant 0 : i32
    %c0_i32_1 = arith.constant 0 : i32
    %c0_i32_2 = arith.constant 0 : i32
    return %c0_i32, %c0_i32_0, %c0_i32_1 : i32, i32, i32
  }
  func.func @transform_4(%arg0: i32) -> (i32, i32) {
    %c0_i32 = arith.constant 0 : i32
    %c0_i32_0 = arith.constant 0 : i32
    %c0_i32_1 = arith.constant 0 : i32
    return %c0_i32, %c0_i32_0 : i32, i32
  }
  func.func @transform_5(%arg0: i32) -> (i32, i32, i32) {
    %c0_i32 = arith.constant 0 : i32
    %c0_i32_0 = arith.constant 0 : i32
    %c0_i32_1 = arith.constant 0 : i32
    return %arg0, %c0_i32, %c0_i32_0 : i32, i32, i32
  }
}

</mosaic_0001>

<bundles_post_ra>
// kernel: tile.18
= control target key start
LH: loop header
LB: loop body
LE: loop exit
PB: predicated region body
PF: predicated region fallthrough
CT: control target
= control target key end

     0   :  { %s28_s0 = inlined_call_operand.vmem [shape: f32[4], index: 0, kind: input, shape index: {}]   ;;  %s29_s1 = inlined_call_operand.vmem [shape: f32[16,4], index: 1, kind: output, shape index: {}]  }
   0x1   :  { %v4_v0 = vld [vmem:[%s28_s0] ss:$0 sm:$0xff] }
   0x2   :  { %5 = vst [vmem:[%s29_s1] sm:$0xff] %v4_v0  ;;  %8 = vst [vmem:[%s29_s1 + $0x8] sm:$0xff] %v4_v0 }

// kernel: tile.19
= control target key start
LH: loop header
LB: loop body
LE: loop exit
PB: predicated region body
PF: predicated region fallthrough
CT: control target
= control target key end

     0   :  { %s133_s10 = smov 60   ;;  %s134_s11 = smov 52   ;;  %vm3_vm0 = vcmask 31744   ;;  %vm9_vm1 = vcmask 523744   ;;  %vm15_vm2 = vcmask 490944   ;;  %vm21_vm3 = vcmask 458144   ;;  %s209_s0 = inlined_call_operand.vmem [shape: f32[16,4], index: 0, kind: input, shape index: {}]   ;;  %s210_s1 = inlined_call_operand.vmem [shape: f32[1,64], index: 1, kind: output, shape index: {}]  }
   0x1   :  { %v103_v0 = vld [vmem:[%s209_s0 + $0xf] sm:$0x1]   ;;  %v105_v1 = vld [vmem:[%s209_s0 + $0xd] sm:$0x1]   ;;  %v104_v2 = vld [vmem:[%s209_s0 + $0xe] sm:$0x1]  }
   0x2   :  { %7 = vrot.lane.b32.xlu0 %v103_v0, %s133_s10  ;;  %19 = vrot.lane.b32.xlu1 %v105_v1, %s134_s11  ;;  %v106_v3 = vld [vmem:[%s209_s0 + $0xc] sm:$0x1]   ;;  %s135_s16 = smov 56   ;;  %s136_s17 = smov 48   ;;  %v107_v4 = vld [vmem:[%s209_s0 + $0xb] sm:$0x1]  }
   0x3   :  { %v108_v5 = vld [vmem:[%s209_s0 + $0xa] sm:$0x1]   ;;  %v2_v6 = vld [vmem:[%s209_s0] sm:$0x1]   ;;  %s137_s24 = smov 44   ;;  %s138_s25 = smov 40  }
   0x4   :  { %4 = vst.msk [vmem:[#allocation0] sm:$0x1] %vm3_vm0, %v2_v6   ;;  %v109_v7 = vld [vmem:[%s209_s0 + $0x9] sm:$0x1]   ;;  %v110_v8 = vld [vmem:[%s209_s0 + $0x8] sm:$0x1]  }
   0x5   :  { %s139_s30 = smov 36   ;;  %s140_s2 = smov 32   ;;  %v111_v9 = vld [vmem:[%s209_s0 + $0x7] sm:$0x1]   ;;  %v112_v10 = vld [vmem:[%s209_s0 + $0x6] sm:$0x1]  }
   0x6   :  { %13 = vrot.lane.b32.xlu0 %v104_v2, %s135_s16  ;;  %25 = vrot.lane.b32.xlu1 %v106_v3, %s136_s17  ;;  %s141_s7 = smov 28   ;;  %s142_s8 = smov 24   ;;  %v113_v11 = vld [vmem:[%s209_s0 + $0x5] sm:$0x1]   ;;  %v114_v12 = vld [vmem:[%s209_s0 + $0x4] sm:$0x1]  }
   0x7   :  { %s143_s13 = smov 20   ;;  %s144_s14 = smov 16   ;;  %v115_v13 = vld [vmem:[%s209_s0 + $0x3] sm:$0x1]   ;;  %v116_v14 = vld [vmem:[%s209_s0 + $0x2] sm:$0x1]  }
   0x8   :  { %s145_s19 = smov 12   ;;  %s146_s20 = smov 8   ;;  %v117_v15 = vld [vmem:[%s209_s0 + $0x1] sm:$0x1]   ;;  %vm27_vm4 = vcmask 425344   ;;  %vm33_vm5 = vcmask 392544  }
   0x9   :  { %s147_s0 = smov 4   ;;  %vm39_vm6 = vcmask 359744   ;;  %vm45_vm7 = vcmask 326944   ;;  %vm51_vm8 = vcmask 294144   ;;  %vm57_vm9 = vcmask 261344  }
   0xa   :  { %31 = vrot.lane.b32.xlu0 %v107_v4, %s137_s24  ;;  %37 = vrot.lane.b32.xlu1 %v108_v5, %s138_s25  ;;  %vm63_vm10 = vcmask 228544   ;;  %vm69_vm11 = vcmask 195744   ;;  %vm75_vm12 = vcmask 162944   ;;  %vm81_vm13 = vcmask 130144  }
   0xb   :  { %vm87_vm14 = vcmask 97344   ;;  %vm93_vm15 = vcmask 64544  }
   0xe   :  { %43 = vrot.lane.b32.xlu0 %v109_v7, %s139_s30  ;;  %49 = vrot.lane.b32.xlu1 %v110_v8, %s140_s2 }
  0x12   :  { %55 = vrot.lane.b32.xlu0 %v111_v9, %s141_s7  ;;  %61 = vrot.lane.b32.xlu1 %v112_v10, %s142_s8 }
  0x16   :  { %67 = vrot.lane.b32.xlu0 %v113_v11, %s143_s13  ;;  %73 = vrot.lane.b32.xlu1 %v114_v12, %s144_s14 }
  0x1a   :  { %79 = vrot.lane.b32.xlu0 %v115_v13, %s145_s19  ;;  %85 = vrot.lane.b32.xlu1 %v116_v14, %s146_s20 }
  0x1e   :  { %91 = vrot.lane.b32.xlu0 %v117_v15, %s147_s0 }
  0x74   :  { %v8_v16 = vpop.permute.xlu0 %7   ;;  %v20_v17 = vpop.permute.xlu1 %19  }
  0x75   :  { %10 = vst.msk [vmem:[#allocation0] sm:$0x1] %vm9_vm1, %v8_v16  }
  0x78   :  { %v14_v18 = vpop.permute.xlu0 %13   ;;  %v26_v19 = vpop.permute.xlu1 %25  }
  0x79   :  { %16 = vst.msk [vmem:[#allocation0] sm:$0x1] %vm15_vm2, %v14_v18  }
  0x7a   :  { %22 = vst.msk [vmem:[#allocation0] sm:$0x1] %vm21_vm3, %v20_v17  }
  0x7b   :  { %28 = vst.msk [vmem:[#allocation0] sm:$0x1] %vm27_vm4, %v26_v19  }
  0x7c   :  { %v32_v20 = vpop.permute.xlu0 %31   ;;  %v38_v21 = vpop.permute.xlu1 %37  }
  0x7d   :  { %34 = vst.msk [vmem:[#allocation0] sm:$0x1] %vm33_vm5, %v32_v20  }
  0x7e   :  { %40 = vst.msk [vmem:[#allocation0] sm:$0x1] %vm39_vm6, %v38_v21  }
  0x80   :  { %v44_v22 = vpop.permute.xlu0 %43   ;;  %v50_v23 = vpop.permute.xlu1 %49  }
  0x81   :  { %46 = vst.msk [vmem:[#allocation0] sm:$0x1] %vm45_vm7, %v44_v22  }
  0x82   :  { %52 = vst.msk [vmem:[#allocation0] sm:$0x1] %vm51_vm8, %v50_v23  }
  0x84   :  { %v56_v24 = vpop.permute.xlu0 %55   ;;  %v62_v25 = vpop.permute.xlu1 %61  }
  0x85   :  { %58 = vst.msk [vmem:[#allocation0] sm:$0x1] %vm57_vm9, %v56_v24  }
  0x86   :  { %64 = vst.msk [vmem:[#allocation0] sm:$0x1] %vm63_vm10, %v62_v25  }
  0x88   :  { %v68_v26 = vpop.permute.xlu0 %67   ;;  %v74_v27 = vpop.permute.xlu1 %73  }
  0x89   :  { %70 = vst.msk [vmem:[#allocation0] sm:$0x1] %vm69_vm11, %v68_v26  }
  0x8a   :  { %76 = vst.msk [vmem:[#allocation0] sm:$0x1] %vm75_vm12, %v74_v27  }
  0x8c   :  { %v80_v28 = vpop.permute.xlu0 %79   ;;  %v86_v29 = vpop.permute.xlu1 %85  }
  0x8d   :  { %82 = vst.msk [vmem:[#allocation0] sm:$0x1] %vm81_vm13, %v80_v28  }
  0x8e   :  { %88 = vst.msk [vmem:[#allocation0] sm:$0x1] %vm87_vm14, %v86_v29  }
  0x90   :  { %v92_v30 = vpop.permute.xlu0 %91  }
  0x91   :  { %94 = vst.msk [vmem:[#allocation0] sm:$0x1] %vm93_vm15, %v92_v30  }
  0x98   :  { %v99_v31 = vld [vmem:[#allocation0] sm:$0x1] }
  0x99   :  { %102 = vst [vmem:[%s210_s1] sm:$0x1] %v99_v31 }

// kernel: tile.28
= control target key start
LH: loop header
LB: loop body
LE: loop exit
PB: predicated region body
PF: predicated region fallthrough
CT: control target
= control target key end

     0   :  { %s28_s0 = inlined_call_operand.vmem [shape: f32[8], index: 0, kind: input, shape index: {}]   ;;  %s29_s1 = inlined_call_operand.vmem [shape: f32[16,8], index: 1, kind: output, shape index: {}]  }
   0x1   :  { %v4_v0 = vld [vmem:[%s28_s0] ss:$0 sm:$0xff] }
   0x2   :  { %5 = vst [vmem:[%s29_s1] sm:$0xff] %v4_v0  ;;  %8 = vst [vmem:[%s29_s1 + $0x8] sm:$0xff] %v4_v0 }

// kernel: tile.29
= control target key start
LH: loop header
LB: loop body
LE: loop exit
PB: predicated region body
PF: predicated region fallthrough
CT: control target
= control target key end

     0   :  { %s133_s10 = smov 120   ;;  %s134_s11 = smov 104   ;;  %vm3_vm0 = vcmask 64512   ;;  %vm9_vm1 = vcmask 1048512   ;;  %vm15_vm2 = vcmask 982912   ;;  %vm21_vm3 = vcmask 917312   ;;  %s209_s0 = inlined_call_operand.vmem [shape: f32[16,8], index: 0, kind: input, shape index: {}]   ;;  %s210_s1 = inlined_call_operand.vmem [shape: f32[1,128], index: 1, kind: output, shape index: {}]  }
   0x1   :  { %v103_v0 = vld [vmem:[%s209_s0 + $0xf] sm:$0x1]   ;;  %v105_v1 = vld [vmem:[%s209_s0 + $0xd] sm:$0x1]   ;;  %v104_v2 = vld [vmem:[%s209_s0 + $0xe] sm:$0x1]  }
   0x2   :  { %7 = vrot.lane.b32.xlu0 %v103_v0, %s133_s10  ;;  %19 = vrot.lane.b32.xlu1 %v105_v1, %s134_s11  ;;  %v106_v3 = vld [vmem:[%s209_s0 + $0xc] sm:$0x1]   ;;  %s135_s16 = smov 112   ;;  %s136_s17 = smov 96   ;;  %v107_v4 = vld [vmem:[%s209_s0 + $0xb] sm:$0x1]  }
   0x3   :  { %v108_v5 = vld [vmem:[%s209_s0 + $0xa] sm:$0x1]   ;;  %v2_v6 = vld [vmem:[%s209_s0] sm:$0x1]   ;;  %s137_s24 = smov 88   ;;  %s138_s25 = smov 80  }
   0x4   :  { %4 = vst.msk [vmem:[#allocation0] sm:$0x1] %vm3_vm0, %v2_v6   ;;  %v109_v7 = vld [vmem:[%s209_s0 + $0x9] sm:$0x1]   ;;  %v110_v8 = vld [vmem:[%s209_s0 + $0x8] sm:$0x1]  }
   0x5   :  { %s139_s30 = smov 72   ;;  %s140_s2 = smov 64   ;;  %v111_v9 = vld [vmem:[%s209_s0 + $0x7] sm:$0x1]   ;;  %v112_v10 = vld [vmem:[%s209_s0 + $0x6] sm:$0x1]  }
   0x6   :  { %13 = vrot.lane.b32.xlu0 %v104_v2, %s135_s16  ;;  %25 = vrot.lane.b32.xlu1 %v106_v3, %s136_s17  ;;  %s141_s7 = smov 56   ;;  %s142_s8 = smov 48   ;;  %v113_v11 = vld [vmem:[%s209_s0 + $0x5] sm:$0x1]   ;;  %v114_v12 = vld [vmem:[%s209_s0 + $0x4] sm:$0x1]  }
   0x7   :  { %s143_s13 = smov 40   ;;  %s144_s14 = smov 32   ;;  %v115_v13 = vld [vmem:[%s209_s0 + $0x3] sm:$0x1]   ;;  %v116_v14 = vld [vmem:[%s209_s0 + $0x2] sm:$0x1]  }
   0x8   :  { %s145_s19 = smov 24   ;;  %s146_s20 = smov 16   ;;  %v117_v15 = vld [vmem:[%s209_s0 + $0x1] sm:$0x1]   ;;  %vm27_vm4 = vcmask 851712   ;;  %vm33_vm5 = vcmask 786112  }
   0x9   :  { %s147_s0 = smov 8   ;;  %vm39_vm6 = vcmask 720512   ;;  %vm45_vm7 = vcmask 654912   ;;  %vm51_vm8 = vcmask 589312   ;;  %vm57_vm9 = vcmask 523712  }
   0xa   :  { %31 = vrot.lane.b32.xlu0 %v107_v4, %s137_s24  ;;  %37 = vrot.lane.b32.xlu1 %v108_v5, %s138_s25  ;;  %vm63_vm10 = vcmask 458112   ;;  %vm69_vm11 = vcmask 392512   ;;  %vm75_vm12 = vcmask 326912   ;;  %vm81_vm13 = vcmask 261312  }
   0xb   :  { %vm87_vm14 = vcmask 195712   ;;  %vm93_vm15 = vcmask 130112  }
   0xe   :  { %43 = vrot.lane.b32.xlu0 %v109_v7, %s139_s30  ;;  %49 = vrot.lane.b32.xlu1 %v110_v8, %s140_s2 }
  0x12   :  { %55 = vrot.lane.b32.xlu0 %v111_v9, %s141_s7  ;;  %61 = vrot.lane.b32.xlu1 %v112_v10, %s142_s8 }
  0x16   :  { %67 = vrot.lane.b32.xlu0 %v113_v11, %s143_s13  ;;  %73 = vrot.lane.b32.xlu1 %v114_v12, %s144_s14 }
  0x1a   :  { %79 = vrot.lane.b32.xlu0 %v115_v13, %s145_s19  ;;  %85 = vrot.lane.b32.xlu1 %v116_v14, %s146_s20 }
  0x1e   :  { %91 = vrot.lane.b32.xlu0 %v117_v15, %s147_s0 }
  0x74   :  { %v8_v16 = vpop.permute.xlu0 %7   ;;  %v20_v17 = vpop.permute.xlu1 %19  }
  0x75   :  { %10 = vst.msk [vmem:[#allocation0] sm:$0x1] %vm9_vm1, %v8_v16  }
  0x78   :  { %v14_v18 = vpop.permute.xlu0 %13   ;;  %v26_v19 = vpop.permute.xlu1 %25  }
  0x79   :  { %16 = vst.msk [vmem:[#allocation0] sm:$0x1] %vm15_vm2, %v14_v18  }
  0x7a   :  { %22 = vst.msk [vmem:[#allocation0] sm:$0x1] %vm21_vm3, %v20_v17  }
  0x7b   :  { %28 = vst.msk [vmem:[#allocation0] sm:$0x1] %vm27_vm4, %v26_v19  }
  0x7c   :  { %v32_v20 = vpop.permute.xlu0 %31   ;;  %v38_v21 = vpop.permute.xlu1 %37  }
  0x7d   :  { %34 = vst.msk [vmem:[#allocation0] sm:$0x1] %vm33_vm5, %v32_v20  }
  0x7e   :  { %40 = vst.msk [vmem:[#allocation0] sm:$0x1] %vm39_vm6, %v38_v21  }
  0x80   :  { %v44_v22 = vpop.permute.xlu0 %43   ;;  %v50_v23 = vpop.permute.xlu1 %49  }
  0x81   :  { %46 = vst.msk [vmem:[#allocation0] sm:$0x1] %vm45_vm7, %v44_v22  }
  0x82   :  { %52 = vst.msk [vmem:[#allocation0] sm:$0x1] %vm51_vm8, %v50_v23  }
  0x84   :  { %v56_v24 = vpop.permute.xlu0 %55   ;;  %v62_v25 = vpop.permute.xlu1 %61  }
  0x85   :  { %58 = vst.msk [vmem:[#allocation0] sm:$0x1] %vm57_vm9, %v56_v24  }
  0x86   :  { %64 = vst.msk [vmem:[#allocation0] sm:$0x1] %vm63_vm10, %v62_v25  }
  0x88   :  { %v68_v26 = vpop.permute.xlu0 %67   ;;  %v74_v27 = vpop.permute.xlu1 %73  }
  0x89   :  { %70 = vst.msk [vmem:[#allocation0] sm:$0x1] %vm69_vm11, %v68_v26  }
  0x8a   :  { %76 = vst.msk [vmem:[#allocation0] sm:$0x1] %vm75_vm12, %v74_v27  }
  0x8c   :  { %v80_v28 = vpop.permute.xlu0 %79   ;;  %v86_v29 = vpop.permute.xlu1 %85  }
  0x8d   :  { %82 = vst.msk [vmem:[#allocation0] sm:$0x1] %vm81_vm13, %v80_v28  }
  0x8e   :  { %88 = vst.msk [vmem:[#allocation0] sm:$0x1] %vm87_vm14, %v86_v29  }
  0x90   :  { %v92_v30 = vpop.permute.xlu0 %91  }
  0x91   :  { %94 = vst.msk [vmem:[#allocation0] sm:$0x1] %vm93_vm15, %v92_v30  }
  0x98   :  { %v99_v31 = vld [vmem:[#allocation0] sm:$0x1] }
  0x99   :  { %102 = vst [vmem:[%s210_s1] sm:$0x1] %v99_v31 }

// kernel: basic_conv2d.1
= control target key start
LH: loop header
LB: loop body
LE: loop exit
PB: predicated region body
PF: predicated region fallthrough
CT: control target
= control target key end

     0   :  { %s740_s18 = smov 0   ;;  %s830_s0 = inlined_call_operand.vmem [shape: f32[2,16,64], index: 0, kind: input, shape index: {}]   ;;  %s831_s1 = inlined_call_operand.vmem [shape: f32[1,64], index: 1, kind: input, shape index: {}]   ;;  %s832_s2 = inlined_call_operand.vmem [shape: f32[1,64], index: 2, kind: input, shape index: {}]   ;;  %s833_s3 = inlined_call_operand.vmem [shape: bf16[3,64,128], index: 3, kind: input, shape index: {}]   ;;  %s834_s4 = inlined_call_operand.vmem [shape: f32[1,128], index: 4, kind: input, shape index: {}]   ;;  %s835_s5 = inlined_call_operand.vmem [shape: f32[2,16,128], index: 5, kind: output, shape index: {}]  }
   0x1 LB: > { %s580_s19 = sadd.s32 4294967295, %s706_s18   ;;  %p584_p0 = scmp.ge.s32.totalorder %s706_s18, 1  ;;  %s706_s18 = sphi %s740_s18, %s15_s18  }
   0x2   : > { %p187_p1 = scmp.lt.s32.totalorder %s706_s18, 3 }
   0x4   : > { %p188_p2 = pnand %p584_p0, %p187_p1 }
   0x5   : > { %p215_p3 = scmp.lt.s32.totalorder (!%p188_p2), %s580_s19, 1 }
   0x6   : > { %191 = sbr.rel (%p188_p2) target bundleno = 255 (0xff), region = 40 }
   0xb   : > { %v688_v0 = vld [vmem:[%s833_s3 + $0x38] sm:$0xff]   ;;  %v708_v1 = vmov 0.0   ;;  %v690_v3 = vld [vmem:[%s833_s3 + $0x30] sm:$0xff]   ;;  %vm709_vm0 = vmmov 0   ;;  %s837_s19 = smov (!%p215_p3, %s580_s19), 1  ;;  %v692_v5 = vld [vmem:[%s833_s3 + $0x28] sm:$0xff]  }
   0xc   : > { %642 = vmatprep.subr.bf16.mxu0 %v708_v1  ;;  %654 = vmatprep.subr.bf16.mxu1 %v708_v1  ;;  %v689_v2 = vld [vmem:[%s833_s3 + $0x18] sm:$0xff]   ;;  %v691_v4 = vld [vmem:[%s833_s3 + $0x10] sm:$0xff]   ;;  %s625_s30 = sshll.u32 %s837_s19, 4  ;;  %v693_v6 = vld [vmem:[%s833_s3 + $0x8] sm:$0xff]   ;;  %vm258_vm1 = vcmask 1040384   ;;  %vm317_vm4 = vcmask 523264  }
   0xd   : > { %643 = vmatpush3.bf16.msra.mxu0 %v688_v0  ;;  %650 = vmatprep.mubr.msk.bf16.mxu0 %vm709_vm0, %v708_v1  ;;  %s219_s10 = scalar_lea.vmem %s830_s0, %s625_s30  ;;  %v589_v9 = vld [vmem:[%s831_s1] ss:$0 sm:$0xff]  ;;  %vm259_vm2 = vsmask.f32 256  ;;  %vm280_vm5 = vsmask.f32 7424  ;;  %s224_s9 = scalar_lea.vmem %s835_s5, %s625_s30 }
   0xe   : > { %655 = vmatpush3.bf16.msra.mxu1 %v689_v2  ;;  %644 = vmatprep.subr.bf16.mxu0 %v708_v1  ;;  %v226_v7 = vld [vmem:[%s219_s10] sm:$0xff]  ;;  %v227_v8 = vld [vmem:[%s219_s10 + $0x8] sm:$0xff]  ;;  %vm260_vm3 = vmand %vm258_vm1, %vm259_vm2  ;;  %vm440_vm6 = vcmask 1046528  }
   0xf   : > { %656 = vmatprep.subr.bf16.mxu1 %v708_v1  ;;  %662 = vmatprep.mubr.msk.bf16.mxu1 %vm709_vm0, %v708_v1  ;;  %v235_v10 = vmul.f32 %v589_v9, %v226_v7  ;;  %v236_v11 = vmul.f32 %v589_v9, %v227_v8  ;;  %v590_v12 = vld [vmem:[%s832_s2] ss:$0 sm:$0xff]  ;;  %v696_v32 = vld [vmem:[%s833_s3 + $0x58] sm:$0xff]   ;;  %v697_v34 = vld [vmem:[%s833_s3 + $0x50] sm:$0xff]  }
  0x10   : > { %v694_v13 = vld [vmem:[%s833_s3 + $0x20] sm:$0xff]   ;;  %v698_v35 = vld [vmem:[%s833_s3 + $0x48] sm:$0xff]  }
  0x11   : > { %645 = vmatpush3.bf16.msra.mxu0 %v690_v3  ;;  %v695_v14 = vld [vmem:[%s833_s3] sm:$0xff]   ;;  %v244_v15 = vadd.f32 %v590_v12, %v235_v10  ;;  %v245_v16 = vadd.f32 %v590_v12, %v236_v11 }
  0x12   : > { %657 = vmatpush3.bf16.msra.mxu1 %v691_v4  ;;  %646 = vmatprep.subr.bf16.mxu0 %v708_v1  ;;  %v699_v36 = vld [vmem:[%s833_s3 + $0x40] sm:$0xff]  }
  0x13   : > { %658 = vmatprep.subr.bf16.mxu1 %v708_v1  ;;  %v246_v17 = vmax.f32 %v244_v15, 0.0  ;;  %v247_v18 = vmax.f32 %v245_v16, 0.0  ;;  %v622_v50 = vld [vmem:[%s834_s4] ss:$0 sm:$0xff] }
  0x15   : > { %647 = vmatpush3.bf16.msra.mxu0 %v692_v5  ;;  %v248_v19 = vpack.c.bf16 %v247_v18, %v246_v17 }
  0x16   : > { %659 = vmatpush3.bf16.msra.mxu1 %v693_v6  ;;  %648 = vmatprep.subr.bf16.mxu0 %v708_v1 }
  0x17   : > { %660 = vmatprep.subr.bf16.mxu1 %v708_v1  ;;  %v250_v20 = vshrl.u32 %v248_v19, 16  ;;  %v253_v21 = vshll.u32 %v248_v19, 16 }
  0x19   : > { %649 = vmatpush3.bf16.msra.mxu0 %v694_v13  ;;  %v252_v22 = vrot.slane %v250_v20, 7 }
  0x1a   : > { %661 = vmatpush3.bf16.msra.mxu1 %v695_v14  ;;  %666 = vmatprep.subr.bf16.mxu0 %v708_v1 }
  0x1b   : > { %v255_v23 = vor.u32 %v253_v21, %v252_v22  ;;  %v262_v24 = vsel %vm260_vm3, %v252_v22, 0 }
  0x1c   : > { %v289_v25 = vshll.u32 %v262_v24, 16  ;;  %v442_v38 = vrot.slane %v262_v24, 1 }
  0x1d   : > { %v261_v26 = vsel %vm260_vm3, 0, %v255_v23 }
  0x1e   : > { %v282_v27 = vshrl.u32 %v261_v26, 16  ;;  %v284_v28 = vshll.u32 %v261_v26, 16  ;;  %663 = vmatmul.mubr.msk.bf16.vlgmr.msra.gmra.mxu1 %vm317_vm4, %v261_v26  ;;  %v291_v30 = vrot.slane %v289_v25, 1  ;;  %v441_v37 = vrot.slane %v261_v26, 1 }
  0x20   : > { %v286_v29 = vrot.slane %v284_v28, 1  ;;  %v443_v39 = vsel %vm440_vm6, %v441_v37, %v442_v38 }
  0x22   : > { %v287_v31 = vor.u32 %v286_v29, %v282_v27 }
  0x24   : > { %v292_v33 = vsel %vm280_vm5, %v287_v31, %v291_v30 }
  0x25   : > { %651 = vmatmul.mubr.msk.bf16.vlgmr.msra.gmra.mxu0 %vm317_vm4, %v292_v33 }
  0x26   : > { %667 = vmatpush3.bf16.msra.mxu0 %v696_v32  ;;  %674 = vmatprep.mubr.msk.bf16.mxu0 %vm709_vm0, %v708_v1 }
  0x27   : > { %668 = vmatprep.subr.bf16.mxu0 %v708_v1 }
  0x2a   : > { %669 = vmatpush3.bf16.msra.mxu0 %v697_v34 }
  0x2b   : > { %670 = vmatprep.subr.bf16.mxu0 %v708_v1 }
  0x2e   : > { %671 = vmatpush3.bf16.msra.mxu0 %v698_v35 }
  0x2f   : > { %672 = vmatprep.subr.bf16.mxu0 %v708_v1 }
  0x32   : > { %673 = vmatpush3.bf16.msra.mxu0 %v699_v36 }
  0x35   : > { %675 = vmatmul.mubr.msk.bf16.vlgmr.msra.gmra.mxu0 %vm317_vm4, %v443_v39 }
  0xde   : > { %v422_v40 = vpop.f32.mrf.mxu1 }
  0xe0   : > { %v664_v41 = vpop.f32.mrf.mxu1 }
  0xe2   : > { %v425_v42 = vpop.f32.mrf.mxu1 }
  0xe4   : > { %v665_v43 = vpop.f32.mrf.mxu1 }
  0xe5   : > { %v355_v44 = vpop.f32.mrf.mxu0 }
  0xe6   : > { %v423_v48 = vadd.f32 %v422_v40, %v355_v44 }
  0xe7   : > { %v652_v45 = vpop.f32.mrf.mxu0 }
  0xe9   : > { %v358_v46 = vpop.f32.mrf.mxu0 }
  0xea   : > { %v426_v53 = vadd.f32 %v425_v42, %v358_v46 }
  0xeb   : > { %v653_v47 = vpop.f32.mrf.mxu0 }
  0xf5   : > { %v505_v49 = vpop.f32.mrf.mxu0 }
  0xf6   : > { %v512_v51 = vadd.f32 %v505_v49, %v423_v48 }
  0xf7   : > { %v676_v52 = vpop.f32.mrf.mxu0 }
  0xf8   : > { %v521_v54 = vadd.f32 %v622_v50, %v512_v51 }
  0xf9   : > { %v508_v55 = vpop.f32.mrf.mxu0 }
  0xfa   : > { %523 = vst [vmem:[%s224_s9] sm:$0xff] %v521_v54  ;;  %v513_v56 = vadd.f32 %v508_v55, %v426_v53 }
  0xfb   : > { %v677_v57 = vpop.f32.mrf.mxu0 }
  0xfc   : > { %v522_v58 = vadd.f32 %v622_v50, %v513_v56 }
  0xfe   : > { %524 = vst [vmem:[%s224_s9 + $0x8] sm:$0xff] %v522_v58 }
  0xff PF: > { %s15_s18 = sadd.s32 1, %s706_s18  }
 0x100   : > { %p12_p4 = scmp.ge.s32.totalorder %s15_s18, 4  }
 0x102   :  { %14 = sbr.rel (!%p12_p4) target bundleno = 1 (0x1), region = 72 }

</bundles_post_ra>
